<compile_context>
chip_gen: v7x
topology: tpu7x:2x2x1
jax: 0.10.0
libtpu: 0.0.40
codegen_flags: <defaults>
</compile_context>

<pallas_src>
import functools

import jax
import jax.numpy as jnp
import numpy as np
from jax.experimental import pallas as pl
from jax.experimental.pallas import tpu as pltpu


def _illum_loss_kernel(lgt_ref, dirs_ref, gt_ref, vlogit_ref, vsign_ref,
                       pred_ref, rad_part_ref, vis_part_ref,
                       *, nm, tile_n, use_l2, has_tail):
    """One point-tile of the IllumLoss forward.

    Refs (lane-dense, point axis last, channel axes leading):
      lgt_ref    (7, L, TN)   rows: [lobe_x, lobe_y, lobe_z, lambda, mu_r, mu_g, mu_b]
      dirs_ref   (3, S, TN)
      gt_ref     (3, S, TN)
      vlogit_ref (2, S, TN)
      vsign_ref  (S, TN)      +1 where CE label == 1, -1 where label == 0
      pred_ref   (3, S, TN)   lane-dense predicted radiance (full-tile stores)
      rad/vis_part_ref (1, 1, TN) per-lane partial sums for this grid block

    Masking invariant: the ragged tail block reads stale VMEM in its dead
    lanes.  All math is lane-local (the only reduction is over S, i.e.
    sublanes within a lane), so garbage never mixes into valid lanes and is
    killed by the post-reduction jnp.where select below.  Do not move any
    cross-lane reduction above that select.
    """
    f32 = jnp.float32
    n_samp = dirs_ref.shape[1]

    lgt = lgt_ref[...].astype(f32)                       # (7, L, TN)
    lobes = lgt[0:3]                                     # (3, L, TN) leading-dim views
    lam = lgt[3]                                         # (L, TN)
    mus = lgt[4:7]                                       # (3, L, TN)
    n_lobes = lobes.shape[1]

    # Per-block O(L*TN) precompute hoisted off the O(S*L*TN) hot loop:
    #   exp(lam * (dir . unit_lobe - 1)) == exp(dir . (lam * unit_lobe) - lam)
    inv_norm = jax.lax.rsqrt(lobes[0] * lobes[0]
                             + lobes[1] * lobes[1]
                             + lobes[2] * lobes[2])      # (L, TN)
    sl = lobes * (lam * inv_norm)[None]                  # lambda-scaled unit lobes
    neg_lam = -lam                                       # (L, TN)

    d0 = dirs_ref[0].astype(f32)                         # (S, TN)
    d1 = dirs_ref[1].astype(f32)
    d2 = dirs_ref[2].astype(f32)

    p0 = jnp.zeros((n_samp, tile_n), f32)
    p1 = jnp.zeros((n_samp, tile_n), f32)
    p2 = jnp.zeros((n_samp, tile_n), f32)
    # Lobe loop: intermediates stay O(S*TN) regardless of L (no (S,L,TN) tensors,
    # no 3x re-read of expo).  L is small, so a static unrolled loop is fine.
    for l in range(n_lobes):
        arg = (d0 * sl[0, l][None, :]
               + d1 * sl[1, l][None, :]
               + d2 * sl[2, l][None, :]
               + neg_lam[l][None, :])                    # (S, TN)
        e = jnp.exp(arg)                                 # EUP slot
        p0 = p0 + e * mus[0, l][None, :]
        p1 = p1 + e * mus[1, l][None, :]
        p2 = p2 + e * mus[2, l][None, :]

    err = None
    for c, pc in enumerate((p0, p1, p2)):
        pred_ref[c] = pc.astype(pred_ref.dtype)          # full-tile (S, TN) store
        d = gt_ref[c].astype(f32) - pc
        e = d * d if use_l2 else jnp.abs(d)
        err = e if err is None else err + e              # (S, TN)
    rad_sum = jnp.sum(err, axis=0, keepdims=True)        # (1, TN), lane-local sum over S

    # 2-class cross entropy as a stable softplus margin:
    #   CE = softplus(-(z_label - z_other)) = softplus(-sign * (z1 - z0))
    z = vlogit_ref[...].astype(f32)                      # (2, S, TN)
    sgn = vsign_ref[...].astype(f32)                     # (S, TN)
    margin = sgn * (z[1] - z[0])
    ce = jnp.maximum(-margin, 0.0) + jnp.log1p(jnp.exp(-jnp.abs(margin)))
    vis_sum = jnp.sum(ce, axis=0, keepdims=True)         # (1, TN)

    if has_tail:   # static: masking only exists when Nm % TN != 0
        i = pl.program_id(0)
        lane = jax.lax.broadcasted_iota(jnp.int32, (1, tile_n), 1)
        valid = (lane + i * tile_n) < nm
        rad_sum = jnp.where(valid, rad_sum, 0.0)         # select after the S-reduction
        vis_sum = jnp.where(valid, vis_sum, 0.0)

    rad_part_ref[0] = rad_sum
    vis_part_ref[0] = vis_sum


def _pick_tile_n(nm, n_lobes, n_samp, tile_n=None):
    """Point-tile size: multiple of 128, per-generation default, VMEM-bounded."""
    if tile_n is None:
        try:
            kind = jax.devices()[0].device_kind.lower()
        except Exception:
            kind = ""
        # v7x: 64 MiB VMEM / TC and 2 TCs -> smaller tiles keep both cores busy.
        tile_n = 256 if ("v7" in kind or "7x" in kind) else 512
    tn = min(tile_n, -(-nm // 128) * 128)                 # no larger than needed
    tn = max(128, (tn // 128) * 128)
    # keep the double-buffered block set + live (S, TN) temps under ~20 MiB
    budget = 20 * 1024 * 1024

    def footprint(t):
        block_elems = (7 * n_lobes + 12 * n_samp + 2) * t  # in + out blocks (f32)
        return block_elems * 4 * 2 + 12 * n_samp * t * 4   # double-buffer + live temps

    while tn > 128 and footprint(tn) > budget:
        tn -= 128
    return tn


def illum_loss(model_outputs, trace_outputs, loss_type="L1", tile_n=None,
               return_pred=False):
    if loss_type not in ("L1", "L2"):
        raise Exception("Unknown loss_type!")
    f32 = jnp.float32

    _ = model_outputs["points"]                      # unused (mirrors PyTorch forward)
    points_mask = model_outputs["network_object_mask"]
    # Boolean masking has a data-dependent shape -> done eagerly in glue, exactly
    # like the PyTorch forward (sample_dirs is already in masked-index space).
    lgtSGs = model_outputs["indirect_sgs"][points_mask]          # (Nm, L, 7)
    gt_radiance = trace_outputs["trace_radiance"][points_mask]   # (Nm, S, 3)
    sample_dirs = trace_outputs["sample_dirs"]                   # (Nm, S, 3)
    gt_vis = trace_outputs["gt_vis"][points_mask]                # (Nm, S, 1) bool
    pred_vis = trace_outputs["pred_vis"][points_mask]            # (Nm, S, 2)

    Nm, L, _ = lgtSGs.shape
    S = sample_dirs.shape[1]

    if Nm == 0:  # guard: empty mask would otherwise give 0/0
        zero = jnp.zeros((), f32)
        if return_pred:
            return zero, zero, jnp.zeros((3, S, 0), f32)
        return zero, zero

    TN = _pick_tile_n(Nm, L, S, tile_n)
    G = -(-Nm // TN)

    # lane-dense, point-major-last; small channel dims LEADING (never sublane).
    # No eager dtype casts here: the kernel casts per-block (no-op for f32).
    lgt_t = jnp.transpose(lgtSGs, (2, 1, 0))         # (7, L, Nm)
    dirs_t = jnp.transpose(sample_dirs, (2, 1, 0))   # (3, S, Nm)
    gt_t = jnp.transpose(gt_radiance, (2, 1, 0))     # (3, S, Nm)
    vlog_t = jnp.transpose(pred_vis, (2, 1, 0))      # (2, S, Nm)
    # CE label = (~gt_vis); pass its +-1 sign so the kernel needs no selects.
    vsign_t = jnp.transpose(1.0 - 2.0 * gt_vis.reshape(Nm, S).astype(f32), (1, 0))

    kernel = functools.partial(_illum_loss_kernel, nm=Nm, tile_n=TN,
                               use_l2=(loss_type == "L2"),
                               has_tail=(Nm % TN != 0))

    pred_t, rad_parts, vis_parts = pl.pallas_call(
        kernel,
        grid=(G,),
        in_specs=[
            pl.BlockSpec((7, L, TN), lambda i: (0, 0, i)),
            pl.BlockSpec((3, S, TN), lambda i: (0, 0, i)),
            pl.BlockSpec((3, S, TN), lambda i: (0, 0, i)),
            pl.BlockSpec((2, S, TN), lambda i: (0, 0, i)),
            pl.BlockSpec((S, TN), lambda i: (0, i)),
        ],
        out_specs=[
            pl.BlockSpec((3, S, TN), lambda i: (0, 0, i)),   # lane-dense pred slab
            pl.BlockSpec((1, 1, TN), lambda i: (i, 0, 0)),   # per-lane partial sums
            pl.BlockSpec((1, 1, TN), lambda i: (i, 0, 0)),
        ],
        out_shape=[
            jax.ShapeDtypeStruct((S and 3, S, G * TN), f32) if False else
            jax.ShapeDtypeStruct((3, S, G * TN), f32),       # padded lane dim -> unmasked stores
            jax.ShapeDtypeStruct((G, 1, TN), f32),
            jax.ShapeDtypeStruct((G, 1, TN), f32),
        ],
        compiler_params=pltpu.CompilerParams(
            dimension_semantics=("parallel",),               # megacore-shardable on v7x
            vmem_limit_bytes=48 * 1024 * 1024,               # above v5e 16MiB / v6e 32MiB defaults
        ),
    )(lgt_t, dirs_t, gt_t, vlog_t, vsign_t)

    # Final reduction in f32 outside the kernel (better precision than a resident
    # scalar accumulator; keeps the single grid axis fully parallel).
    radiance_loss = jnp.sum(rad_parts) / (Nm * S * 3)   # 'mean' reduction
    visibility_loss = jnp.sum(vis_parts) / (Nm * S)     # CE mean over rows
    if return_pred:
        # Returned in its lane-dense layout (3, S, Nm); transpose only if a
        # downstream consumer truly needs (Nm, S, 3) (saves a full HBM pass).
        return radiance_loss, visibility_loss, pred_t[:, :, :Nm]
    return radiance_loss, visibility_loss


# ------------------ pure-JAX reference (matches the PyTorch code) -------------
def _query_indir_illum_ref(lgtSGs, sample_dirs):
    lg = lgtSGs[:, None, :, :]            # (N, 1, L, 7)
    sd = sample_dirs[:, :, None, :]       # (N, S, 1, 3)
    lobes = lg[..., :3] / jnp.linalg.norm(lg[..., :3], axis=-1, keepdims=True)
    lam = lg[..., 3:4]
    mus = lg[..., -3:]
    pred = mus * jnp.exp(lam * (jnp.sum(sd * lobes, axis=-1, keepdims=True) - 1.0))
    return jnp.sum(pred, axis=2)


def _reference(model_outputs, trace_outputs, loss_type):
    mask = model_outputs["network_object_mask"]
    lgt = model_outputs["indirect_sgs"][mask]
    gt = trace_outputs["trace_radiance"][mask]
    pred = _query_indir_illum_ref(lgt, trace_outputs["sample_dirs"])
    diff = gt - pred
    rad = jnp.mean(jnp.abs(diff)) if loss_type == "L1" else jnp.mean(diff * diff)
    gt_vis = trace_outputs["gt_vis"][mask]
    labels = (1 - gt_vis.astype(jnp.int32)).reshape(-1)
    logits = trace_outputs["pred_vis"][mask].reshape(-1, 2)
    logp = jax.nn.log_softmax(logits, axis=-1)
    vis = -jnp.mean(jnp.take_along_axis(logp, labels[:, None], axis=-1))
    return rad, vis, pred


def _make_inputs(key, P, S, L, mask_mod=3):
    ks = jax.random.split(key, 6)
    points_mask = (jnp.arange(P) % mask_mod) != 0         # deterministic mask
    Nm = int(points_mask.sum())
    sample_dirs = jax.random.normal(ks[3], (Nm, S, 3), jnp.float32)
    sample_dirs = sample_dirs / jnp.linalg.norm(sample_dirs, axis=-1, keepdims=True)
    model_outputs = {
        "points": jax.random.normal(ks[0], (P, 3), jnp.float32),
        "network_object_mask": points_mask,
        "indirect_sgs": jax.random.normal(ks[1], (P, L, 7), jnp.float32),
    }
    trace_outputs = {
        "trace_radiance": jax.random.uniform(ks[2], (P, S, 3), jnp.float32),
        "sample_dirs": sample_dirs,
        "gt_vis": jax.random.bernoulli(ks[4], 0.5, (P, S, 1)),
        "pred_vis": jax.random.normal(ks[5], (P, S, 2), jnp.float32),
    }
    return model_outputs, trace_outputs


def _check(model_outputs, trace_outputs, loss_type, tile_n=None):
    rad, vis, pred_lane = illum_loss(model_outputs, trace_outputs, loss_type,
                                     tile_n=tile_n, return_pred=True)
    jax.block_until_ready((rad, vis, pred_lane))
    rad_ref, vis_ref, pred_ref = _reference(model_outputs, trace_outputs, loss_type)
    pred = jnp.transpose(pred_lane, (2, 1, 0))       # (Nm, S, 3), test-side only
    assert np.allclose(np.asarray(pred), np.asarray(pred_ref), rtol=1e-4, atol=1e-4)
    assert np.allclose(np.asarray(rad), np.asarray(rad_ref), rtol=1e-4, atol=1e-5)
    assert np.allclose(np.asarray(vis), np.asarray(vis_ref), rtol=1e-4, atol=1e-5)


if __name__ == "__main__":
    # small shape: 16 points (10 masked-in), 8 samples, 4 SG lobes
    mo, to = _make_inputs(jax.random.PRNGKey(0), P=16, S=8, L=4)
    _check(mo, to, "L1")
    _check(mo, to, "L2")
    # multi-block + ragged tail: 300 points -> Nm=200 -> 2 blocks with TN=128
    mo2, to2 = _make_inputs(jax.random.PRNGKey(1), P=300, S=8, L=4)
    _check(mo2, to2, "L1", tile_n=128)
    print("KERNEL_OK")
</pallas_src>

<mosaic_0001>
module attributes {stable_mosaic.version = 11 : i64} {
  func.func @_illum_loss_kernel(%arg0: i32, %arg1: memref<7x4x128xf32, #tpu.memory_space<vmem>>, %arg2: memref<3x8x128xf32, #tpu.memory_space<vmem>>, %arg3: memref<3x8x128xf32, #tpu.memory_space<vmem>>, %arg4: memref<2x8x128xf32, #tpu.memory_space<vmem>>, %arg5: memref<8x128xf32, #tpu.memory_space<vmem>>, %arg6: memref<3x8x128xf32, #tpu.memory_space<vmem>>, %arg7: memref<1x1x128xf32, #tpu.memory_space<vmem>>, %arg8: memref<1x1x128xf32, #tpu.memory_space<vmem>>) attributes {dimension_semantics = [#tpu.dimension_semantics<parallel>], iteration_bounds = array<i64: 1>, scalar_prefetch = 0 : i64, scratch_operands = 0 : i64, tpu.core_type = #tpu.core_type<tc>, window_params = [{transform_indices = @transform_0, window_bounds = array<i64: 7, 4, 128>}, {transform_indices = @transform_1, window_bounds = array<i64: 3, 8, 128>}, {transform_indices = @transform_2, window_bounds = array<i64: 3, 8, 128>}, {transform_indices = @transform_3, window_bounds = array<i64: 2, 8, 128>}, {transform_indices = @transform_4, window_bounds = array<i64: 8, 128>}, {transform_indices = @transform_5, window_bounds = array<i64: 3, 8, 128>}, {transform_indices = @transform_6, window_bounds = array<i64: 1, 1, 128>}, {transform_indices = @transform_7, window_bounds = array<i64: 1, 1, 128>}]} {
    %c0 = arith.constant 0 : index
    %c0_0 = arith.constant 0 : index
    %c0_1 = arith.constant 0 : index
    %0 = vector.load %arg1[%c0, %c0_0, %c0_1] : memref<7x4x128xf32, #tpu.memory_space<vmem>>, vector<7x4x128xf32>
    %1 = vector.extract_strided_slice %0 {offsets = [0, 0, 0], sizes = [3, 4, 128], strides = [1, 1, 1]} : vector<7x4x128xf32> to vector<3x4x128xf32>
    %2 = vector.extract_strided_slice %0 {offsets = [3, 0, 0], sizes = [1, 4, 128], strides = [1, 1, 1]} : vector<7x4x128xf32> to vector<1x4x128xf32>
    %3 = vector.shape_cast %2 : vector<1x4x128xf32> to vector<4x128xf32>
    %4 = vector.extract_strided_slice %0 {offsets = [4, 0, 0], sizes = [3, 4, 128], strides = [1, 1, 1]} : vector<7x4x128xf32> to vector<3x4x128xf32>
    %5 = vector.extract_strided_slice %1 {offsets = [0, 0, 0], sizes = [1, 4, 128], strides = [1, 1, 1]} : vector<3x4x128xf32> to vector<1x4x128xf32>
    %6 = vector.shape_cast %5 : vector<1x4x128xf32> to vector<4x128xf32>
    %7 = vector.extract_strided_slice %1 {offsets = [0, 0, 0], sizes = [1, 4, 128], strides = [1, 1, 1]} : vector<3x4x128xf32> to vector<1x4x128xf32>
    %8 = vector.shape_cast %7 : vector<1x4x128xf32> to vector<4x128xf32>
    %9 = arith.mulf %6, %8 : vector<4x128xf32>
    %10 = vector.extract_strided_slice %1 {offsets = [1, 0, 0], sizes = [1, 4, 128], strides = [1, 1, 1]} : vector<3x4x128xf32> to vector<1x4x128xf32>
    %11 = vector.shape_cast %10 : vector<1x4x128xf32> to vector<4x128xf32>
    %12 = vector.extract_strided_slice %1 {offsets = [1, 0, 0], sizes = [1, 4, 128], strides = [1, 1, 1]} : vector<3x4x128xf32> to vector<1x4x128xf32>
    %13 = vector.shape_cast %12 : vector<1x4x128xf32> to vector<4x128xf32>
    %14 = arith.mulf %11, %13 : vector<4x128xf32>
    %15 = arith.addf %9, %14 : vector<4x128xf32>
    %16 = vector.extract_strided_slice %1 {offsets = [2, 0, 0], sizes = [1, 4, 128], strides = [1, 1, 1]} : vector<3x4x128xf32> to vector<1x4x128xf32>
    %17 = vector.shape_cast %16 : vector<1x4x128xf32> to vector<4x128xf32>
    %18 = vector.extract_strided_slice %1 {offsets = [2, 0, 0], sizes = [1, 4, 128], strides = [1, 1, 1]} : vector<3x4x128xf32> to vector<1x4x128xf32>
    %19 = vector.shape_cast %18 : vector<1x4x128xf32> to vector<4x128xf32>
    %20 = arith.mulf %17, %19 : vector<4x128xf32>
    %21 = arith.addf %15, %20 : vector<4x128xf32>
    %22 = math.rsqrt %21 : vector<4x128xf32>
    %23 = arith.mulf %3, %22 : vector<4x128xf32>
    %24 = vector.shape_cast %23 : vector<4x128xf32> to vector<1x4x128xf32>
    %25 = vector.broadcast %24 : vector<1x4x128xf32> to vector<3x4x128xf32>
    %26 = arith.mulf %1, %25 : vector<3x4x128xf32>
    %cst = arith.constant 0.000000e+00 : f32
    %27 = vector.broadcast %cst : f32 to vector<4x128xf32>
    %28 = arith.subf %27, %3 : vector<4x128xf32>
    %c0_2 = arith.constant 0 : index
    %c0_3 = arith.constant 0 : index
    %c0_4 = arith.constant 0 : index
    %29 = vector.load %arg2[%c0_2, %c0_3, %c0_4] : memref<3x8x128xf32, #tpu.memory_space<vmem>>, vector<1x8x128xf32>
    %30 = vector.shape_cast %29 : vector<1x8x128xf32> to vector<8x128xf32>
    %c1 = arith.constant 1 : index
    %c0_5 = arith.constant 0 : index
    %c0_6 = arith.constant 0 : index
    %31 = vector.load %arg2[%c1, %c0_5, %c0_6] : memref<3x8x128xf32, #tpu.memory_space<vmem>>, vector<1x8x128xf32>
    %32 = vector.shape_cast %31 : vector<1x8x128xf32> to vector<8x128xf32>
    %c2 = arith.constant 2 : index
    %c0_7 = arith.constant 0 : index
    %c0_8 = arith.constant 0 : index
    %33 = vector.load %arg2[%c2, %c0_7, %c0_8] : memref<3x8x128xf32, #tpu.memory_space<vmem>>, vector<1x8x128xf32>
    %34 = vector.shape_cast %33 : vector<1x8x128xf32> to vector<8x128xf32>
    %cst_9 = arith.constant 0.000000e+00 : f32
    %35 = vector.broadcast %cst_9 : f32 to vector<8x128xf32>
    %cst_10 = arith.constant 0.000000e+00 : f32
    %36 = vector.broadcast %cst_10 : f32 to vector<8x128xf32>
    %cst_11 = arith.constant 0.000000e+00 : f32
    %37 = vector.broadcast %cst_11 : f32 to vector<8x128xf32>
    %38 = vector.extract_strided_slice %26 {offsets = [0, 0, 0], sizes = [1, 1, 128], strides = [1, 1, 1]} : vector<3x4x128xf32> to vector<1x1x128xf32>
    %39 = vector.shape_cast %38 : vector<1x1x128xf32> to vector<128xf32>
    %40 = vector.shape_cast %39 : vector<128xf32> to vector<1x128xf32>
    %41 = vector.broadcast %40 : vector<1x128xf32> to vector<8x128xf32>
    %42 = arith.mulf %30, %41 : vector<8x128xf32>
    %43 = vector.extract_strided_slice %26 {offsets = [1, 0, 0], sizes = [1, 1, 128], strides = [1, 1, 1]} : vector<3x4x128xf32> to vector<1x1x128xf32>
    %44 = vector.shape_cast %43 : vector<1x1x128xf32> to vector<128xf32>
    %45 = vector.shape_cast %44 : vector<128xf32> to vector<1x128xf32>
    %46 = vector.broadcast %45 : vector<1x128xf32> to vector<8x128xf32>
    %47 = arith.mulf %32, %46 : vector<8x128xf32>
    %48 = arith.addf %42, %47 : vector<8x128xf32>
    %49 = vector.extract_strided_slice %26 {offsets = [2, 0, 0], sizes = [1, 1, 128], strides = [1, 1, 1]} : vector<3x4x128xf32> to vector<1x1x128xf32>
    %50 = vector.shape_cast %49 : vector<1x1x128xf32> to vector<128xf32>
    %51 = vector.shape_cast %50 : vector<128xf32> to vector<1x128xf32>
    %52 = vector.broadcast %51 : vector<1x128xf32> to vector<8x128xf32>
    %53 = arith.mulf %34, %52 : vector<8x128xf32>
    %54 = arith.addf %48, %53 : vector<8x128xf32>
    %55 = vector.extract_strided_slice %28 {offsets = [0, 0], sizes = [1, 128], strides = [1, 1]} : vector<4x128xf32> to vector<1x128xf32>
    %56 = vector.shape_cast %55 : vector<1x128xf32> to vector<128xf32>
    %57 = vector.shape_cast %56 : vector<128xf32> to vector<1x128xf32>
    %58 = vector.broadcast %57 : vector<1x128xf32> to vector<8x128xf32>
    %59 = arith.addf %54, %58 : vector<8x128xf32>
    %60 = math.exp %59 : vector<8x128xf32>
    %61 = vector.extract_strided_slice %4 {offsets = [0, 0, 0], sizes = [1, 1, 128], strides = [1, 1, 1]} : vector<3x4x128xf32> to vector<1x1x128xf32>
    %62 = vector.shape_cast %61 : vector<1x1x128xf32> to vector<128xf32>
    %63 = vector.shape_cast %62 : vector<128xf32> to vector<1x128xf32>
    %64 = vector.broadcast %63 : vector<1x128xf32> to vector<8x128xf32>
    %65 = arith.mulf %60, %64 : vector<8x128xf32>
    %66 = arith.addf %35, %65 : vector<8x128xf32>
    %67 = vector.extract_strided_slice %4 {offsets = [1, 0, 0], sizes = [1, 1, 128], strides = [1, 1, 1]} : vector<3x4x128xf32> to vector<1x1x128xf32>
    %68 = vector.shape_cast %67 : vector<1x1x128xf32> to vector<128xf32>
    %69 = vector.shape_cast %68 : vector<128xf32> to vector<1x128xf32>
    %70 = vector.broadcast %69 : vector<1x128xf32> to vector<8x128xf32>
    %71 = arith.mulf %60, %70 : vector<8x128xf32>
    %72 = arith.addf %36, %71 : vector<8x128xf32>
    %73 = vector.extract_strided_slice %4 {offsets = [2, 0, 0], sizes = [1, 1, 128], strides = [1, 1, 1]} : vector<3x4x128xf32> to vector<1x1x128xf32>
    %74 = vector.shape_cast %73 : vector<1x1x128xf32> to vector<128xf32>
    %75 = vector.shape_cast %74 : vector<128xf32> to vector<1x128xf32>
    %76 = vector.broadcast %75 : vector<1x128xf32> to vector<8x128xf32>
    %77 = arith.mulf %60, %76 : vector<8x128xf32>
    %78 = arith.addf %37, %77 : vector<8x128xf32>
    %79 = vector.extract_strided_slice %26 {offsets = [0, 1, 0], sizes = [1, 1, 128], strides = [1, 1, 1]} : vector<3x4x128xf32> to vector<1x1x128xf32>
    %80 = vector.shape_cast %79 : vector<1x1x128xf32> to vector<128xf32>
    %81 = vector.shape_cast %80 : vector<128xf32> to vector<1x128xf32>
    %82 = vector.broadcast %81 : vector<1x128xf32> to vector<8x128xf32>
    %83 = arith.mulf %30, %82 : vector<8x128xf32>
    %84 = vector.extract_strided_slice %26 {offsets = [1, 1, 0], sizes = [1, 1, 128], strides = [1, 1, 1]} : vector<3x4x128xf32> to vector<1x1x128xf32>
    %85 = vector.shape_cast %84 : vector<1x1x128xf32> to vector<128xf32>
    %86 = vector.shape_cast %85 : vector<128xf32> to vector<1x128xf32>
    %87 = vector.broadcast %86 : vector<1x128xf32> to vector<8x128xf32>
    %88 = arith.mulf %32, %87 : vector<8x128xf32>
    %89 = arith.addf %83, %88 : vector<8x128xf32>
    %90 = vector.extract_strided_slice %26 {offsets = [2, 1, 0], sizes = [1, 1, 128], strides = [1, 1, 1]} : vector<3x4x128xf32> to vector<1x1x128xf32>
    %91 = vector.shape_cast %90 : vector<1x1x128xf32> to vector<128xf32>
    %92 = vector.shape_cast %91 : vector<128xf32> to vector<1x128xf32>
    %93 = vector.broadcast %92 : vector<1x128xf32> to vector<8x128xf32>
    %94 = arith.mulf %34, %93 : vector<8x128xf32>
    %95 = arith.addf %89, %94 : vector<8x128xf32>
    %96 = vector.extract_strided_slice %28 {offsets = [1, 0], sizes = [1, 128], strides = [1, 1]} : vector<4x128xf32> to vector<1x128xf32>
    %97 = vector.shape_cast %96 : vector<1x128xf32> to vector<128xf32>
    %98 = vector.shape_cast %97 : vector<128xf32> to vector<1x128xf32>
    %99 = vector.broadcast %98 : vector<1x128xf32> to vector<8x128xf32>
    %100 = arith.addf %95, %99 : vector<8x128xf32>
    %101 = math.exp %100 : vector<8x128xf32>
    %102 = vector.extract_strided_slice %4 {offsets = [0, 1, 0], sizes = [1, 1, 128], strides = [1, 1, 1]} : vector<3x4x128xf32> to vector<1x1x128xf32>
    %103 = vector.shape_cast %102 : vector<1x1x128xf32> to vector<128xf32>
    %104 = vector.shape_cast %103 : vector<128xf32> to vector<1x128xf32>
    %105 = vector.broadcast %104 : vector<1x128xf32> to vector<8x128xf32>
    %106 = arith.mulf %101, %105 : vector<8x128xf32>
    %107 = arith.addf %66, %106 : vector<8x128xf32>
    %108 = vector.extract_strided_slice %4 {offsets = [1, 1, 0], sizes = [1, 1, 128], strides = [1, 1, 1]} : vector<3x4x128xf32> to vector<1x1x128xf32>
    %109 = vector.shape_cast %108 : vector<1x1x128xf32> to vector<128xf32>
    %110 = vector.shape_cast %109 : vector<128xf32> to vector<1x128xf32>
    %111 = vector.broadcast %110 : vector<1x128xf32> to vector<8x128xf32>
    %112 = arith.mulf %101, %111 : vector<8x128xf32>
    %113 = arith.addf %72, %112 : vector<8x128xf32>
    %114 = vector.extract_strided_slice %4 {offsets = [2, 1, 0], sizes = [1, 1, 128], strides = [1, 1, 1]} : vector<3x4x128xf32> to vector<1x1x128xf32>
    %115 = vector.shape_cast %114 : vector<1x1x128xf32> to vector<128xf32>
    %116 = vector.shape_cast %115 : vector<128xf32> to vector<1x128xf32>
    %117 = vector.broadcast %116 : vector<1x128xf32> to vector<8x128xf32>
    %118 = arith.mulf %101, %117 : vector<8x128xf32>
    %119 = arith.addf %78, %118 : vector<8x128xf32>
    %120 = vector.extract_strided_slice %26 {offsets = [0, 2, 0], sizes = [1, 1, 128], strides = [1, 1, 1]} : vector<3x4x128xf32> to vector<1x1x128xf32>
    %121 = vector.shape_cast %120 : vector<1x1x128xf32> to vector<128xf32>
    %122 = vector.shape_cast %121 : vector<128xf32> to vector<1x128xf32>
    %123 = vector.broadcast %122 : vector<1x128xf32> to vector<8x128xf32>
    %124 = arith.mulf %30, %123 : vector<8x128xf32>
    %125 = vector.extract_strided_slice %26 {offsets = [1, 2, 0], sizes = [1, 1, 128], strides = [1, 1, 1]} : vector<3x4x128xf32> to vector<1x1x128xf32>
    %126 = vector.shape_cast %125 : vector<1x1x128xf32> to vector<128xf32>
    %127 = vector.shape_cast %126 : vector<128xf32> to vector<1x128xf32>
    %128 = vector.broadcast %127 : vector<1x128xf32> to vector<8x128xf32>
    %129 = arith.mulf %32, %128 : vector<8x128xf32>
    %130 = arith.addf %124, %129 : vector<8x128xf32>
    %131 = vector.extract_strided_slice %26 {offsets = [2, 2, 0], sizes = [1, 1, 128], strides = [1, 1, 1]} : vector<3x4x128xf32> to vector<1x1x128xf32>
    %132 = vector.shape_cast %131 : vector<1x1x128xf32> to vector<128xf32>
    %133 = vector.shape_cast %132 : vector<128xf32> to vector<1x128xf32>
    %134 = vector.broadcast %133 : vector<1x128xf32> to vector<8x128xf32>
    %135 = arith.mulf %34, %134 : vector<8x128xf32>
    %136 = arith.addf %130, %135 : vector<8x128xf32>
    %137 = vector.extract_strided_slice %28 {offsets = [2, 0], sizes = [1, 128], strides = [1, 1]} : vector<4x128xf32> to vector<1x128xf32>
    %138 = vector.shape_cast %137 : vector<1x128xf32> to vector<128xf32>
    %139 = vector.shape_cast %138 : vector<128xf32> to vector<1x128xf32>
    %140 = vector.broadcast %139 : vector<1x128xf32> to vector<8x128xf32>
    %141 = arith.addf %136, %140 : vector<8x128xf32>
    %142 = math.exp %141 : vector<8x128xf32>
    %143 = vector.extract_strided_slice %4 {offsets = [0, 2, 0], sizes = [1, 1, 128], strides = [1, 1, 1]} : vector<3x4x128xf32> to vector<1x1x128xf32>
    %144 = vector.shape_cast %143 : vector<1x1x128xf32> to vector<128xf32>
    %145 = vector.shape_cast %144 : vector<128xf32> to vector<1x128xf32>
    %146 = vector.broadcast %145 : vector<1x128xf32> to vector<8x128xf32>
    %147 = arith.mulf %142, %146 : vector<8x128xf32>
    %148 = arith.addf %107, %147 : vector<8x128xf32>
    %149 = vector.extract_strided_slice %4 {offsets = [1, 2, 0], sizes = [1, 1, 128], strides = [1, 1, 1]} : vector<3x4x128xf32> to vector<1x1x128xf32>
    %150 = vector.shape_cast %149 : vector<1x1x128xf32> to vector<128xf32>
    %151 = vector.shape_cast %150 : vector<128xf32> to vector<1x128xf32>
    %152 = vector.broadcast %151 : vector<1x128xf32> to vector<8x128xf32>
    %153 = arith.mulf %142, %152 : vector<8x128xf32>
    %154 = arith.addf %113, %153 : vector<8x128xf32>
    %155 = vector.extract_strided_slice %4 {offsets = [2, 2, 0], sizes = [1, 1, 128], strides = [1, 1, 1]} : vector<3x4x128xf32> to vector<1x1x128xf32>
    %156 = vector.shape_cast %155 : vector<1x1x128xf32> to vector<128xf32>
    %157 = vector.shape_cast %156 : vector<128xf32> to vector<1x128xf32>
    %158 = vector.broadcast %157 : vector<1x128xf32> to vector<8x128xf32>
    %159 = arith.mulf %142, %158 : vector<8x128xf32>
    %160 = arith.addf %119, %159 : vector<8x128xf32>
    %161 = vector.extract_strided_slice %26 {offsets = [0, 3, 0], sizes = [1, 1, 128], strides = [1, 1, 1]} : vector<3x4x128xf32> to vector<1x1x128xf32>
    %162 = vector.shape_cast %161 : vector<1x1x128xf32> to vector<128xf32>
    %163 = vector.shape_cast %162 : vector<128xf32> to vector<1x128xf32>
    %164 = vector.broadcast %163 : vector<1x128xf32> to vector<8x128xf32>
    %165 = arith.mulf %30, %164 : vector<8x128xf32>
    %166 = vector.extract_strided_slice %26 {offsets = [1, 3, 0], sizes = [1, 1, 128], strides = [1, 1, 1]} : vector<3x4x128xf32> to vector<1x1x128xf32>
    %167 = vector.shape_cast %166 : vector<1x1x128xf32> to vector<128xf32>
    %168 = vector.shape_cast %167 : vector<128xf32> to vector<1x128xf32>
    %169 = vector.broadcast %168 : vector<1x128xf32> to vector<8x128xf32>
    %170 = arith.mulf %32, %169 : vector<8x128xf32>
    %171 = arith.addf %165, %170 : vector<8x128xf32>
    %172 = vector.extract_strided_slice %26 {offsets = [2, 3, 0], sizes = [1, 1, 128], strides = [1, 1, 1]} : vector<3x4x128xf32> to vector<1x1x128xf32>
    %173 = vector.shape_cast %172 : vector<1x1x128xf32> to vector<128xf32>
    %174 = vector.shape_cast %173 : vector<128xf32> to vector<1x128xf32>
    %175 = vector.broadcast %174 : vector<1x128xf32> to vector<8x128xf32>
    %176 = arith.mulf %34, %175 : vector<8x128xf32>
    %177 = arith.addf %171, %176 : vector<8x128xf32>
    %178 = vector.extract_strided_slice %28 {offsets = [3, 0], sizes = [1, 128], strides = [1, 1]} : vector<4x128xf32> to vector<1x128xf32>
    %179 = vector.shape_cast %178 : vector<1x128xf32> to vector<128xf32>
    %180 = vector.shape_cast %179 : vector<128xf32> to vector<1x128xf32>
    %181 = vector.broadcast %180 : vector<1x128xf32> to vector<8x128xf32>
    %182 = arith.addf %177, %181 : vector<8x128xf32>
    %183 = math.exp %182 : vector<8x128xf32>
    %184 = vector.extract_strided_slice %4 {offsets = [0, 3, 0], sizes = [1, 1, 128], strides = [1, 1, 1]} : vector<3x4x128xf32> to vector<1x1x128xf32>
    %185 = vector.shape_cast %184 : vector<1x1x128xf32> to vector<128xf32>
    %186 = vector.shape_cast %185 : vector<128xf32> to vector<1x128xf32>
    %187 = vector.broadcast %186 : vector<1x128xf32> to vector<8x128xf32>
    %188 = arith.mulf %183, %187 : vector<8x128xf32>
    %189 = arith.addf %148, %188 : vector<8x128xf32>
    %190 = vector.extract_strided_slice %4 {offsets = [1, 3, 0], sizes = [1, 1, 128], strides = [1, 1, 1]} : vector<3x4x128xf32> to vector<1x1x128xf32>
    %191 = vector.shape_cast %190 : vector<1x1x128xf32> to vector<128xf32>
    %192 = vector.shape_cast %191 : vector<128xf32> to vector<1x128xf32>
    %193 = vector.broadcast %192 : vector<1x128xf32> to vector<8x128xf32>
    %194 = arith.mulf %183, %193 : vector<8x128xf32>
    %195 = arith.addf %154, %194 : vector<8x128xf32>
    %196 = vector.extract_strided_slice %4 {offsets = [2, 3, 0], sizes = [1, 1, 128], strides = [1, 1, 1]} : vector<3x4x128xf32> to vector<1x1x128xf32>
    %197 = vector.shape_cast %196 : vector<1x1x128xf32> to vector<128xf32>
    %198 = vector.shape_cast %197 : vector<128xf32> to vector<1x128xf32>
    %199 = vector.broadcast %198 : vector<1x128xf32> to vector<8x128xf32>
    %200 = arith.mulf %183, %199 : vector<8x128xf32>
    %201 = arith.addf %160, %200 : vector<8x128xf32>
    %c0_12 = arith.constant 0 : index
    %c0_13 = arith.constant 0 : index
    %c0_14 = arith.constant 0 : index
    %202 = vector.load %arg6[%c0_12, %c0_13, %c0_14] : memref<3x8x128xf32, #tpu.memory_space<vmem>>, vector<1x8x128xf32>
    %203 = vector.shape_cast %202 : vector<1x8x128xf32> to vector<8x128xf32>
    %204 = vector.shape_cast %189 : vector<8x128xf32> to vector<1x8x128xf32>
    tpu.vector_store %arg6[%c0_12, %c0_13, %c0_14], %204 {strides = array<i32>} : memref<3x8x128xf32, #tpu.memory_space<vmem>>, vector<1x8x128xf32>,
    %c0_15 = arith.constant 0 : index
    %c0_16 = arith.constant 0 : index
    %c0_17 = arith.constant 0 : index
    %205 = vector.load %arg3[%c0_15, %c0_16, %c0_17] : memref<3x8x128xf32, #tpu.memory_space<vmem>>, vector<1x8x128xf32>
    %206 = vector.shape_cast %205 : vector<1x8x128xf32> to vector<8x128xf32>
    %207 = arith.subf %206, %189 : vector<8x128xf32>
    %208 = math.absf %207 : vector<8x128xf32>
    %c1_18 = arith.constant 1 : index
    %c0_19 = arith.constant 0 : index
    %c0_20 = arith.constant 0 : index
    %209 = vector.load %arg6[%c1_18, %c0_19, %c0_20] : memref<3x8x128xf32, #tpu.memory_space<vmem>>, vector<1x8x128xf32>
    %210 = vector.shape_cast %209 : vector<1x8x128xf32> to vector<8x128xf32>
    %211 = vector.shape_cast %195 : vector<8x128xf32> to vector<1x8x128xf32>
    tpu.vector_store %arg6[%c1_18, %c0_19, %c0_20], %211 {strides = array<i32>} : memref<3x8x128xf32, #tpu.memory_space<vmem>>, vector<1x8x128xf32>,
    %c1_21 = arith.constant 1 : index
    %c0_22 = arith.constant 0 : index
    %c0_23 = arith.constant 0 : index
    %212 = vector.load %arg3[%c1_21, %c0_22, %c0_23] : memref<3x8x128xf32, #tpu.memory_space<vmem>>, vector<1x8x128xf32>
    %213 = vector.shape_cast %212 : vector<1x8x128xf32> to vector<8x128xf32>
    %214 = arith.subf %213, %195 : vector<8x128xf32>
    %215 = math.absf %214 : vector<8x128xf32>
    %216 = arith.addf %208, %215 : vector<8x128xf32>
    %c2_24 = arith.constant 2 : index
    %c0_25 = arith.constant 0 : index
    %c0_26 = arith.constant 0 : index
    %217 = vector.load %arg6[%c2_24, %c0_25, %c0_26] : memref<3x8x128xf32, #tpu.memory_space<vmem>>, vector<1x8x128xf32>
    %218 = vector.shape_cast %217 : vector<1x8x128xf32> to vector<8x128xf32>
    %219 = vector.shape_cast %201 : vector<8x128xf32> to vector<1x8x128xf32>
    tpu.vector_store %arg6[%c2_24, %c0_25, %c0_26], %219 {strides = array<i32>} : memref<3x8x128xf32, #tpu.memory_space<vmem>>, vector<1x8x128xf32>,
    %c2_27 = arith.constant 2 : index
    %c0_28 = arith.constant 0 : index
    %c0_29 = arith.constant 0 : index
    %220 = vector.load %arg3[%c2_27, %c0_28, %c0_29] : memref<3x8x128xf32, #tpu.memory_space<vmem>>, vector<1x8x128xf32>
    %221 = vector.shape_cast %220 : vector<1x8x128xf32> to vector<8x128xf32>
    %222 = arith.subf %221, %201 : vector<8x128xf32>
    %223 = math.absf %222 : vector<8x128xf32>
    %224 = arith.addf %216, %223 : vector<8x128xf32>
    %cst_30 = arith.constant dense<0.000000e+00> : vector<128xf32>
    %225 = vector.multi_reduction <add>, %224, %cst_30 [0] : vector<8x128xf32> to vector<128xf32>
    %226 = vector.shape_cast %225 : vector<128xf32> to vector<1x128xf32>
    %c0_31 = arith.constant 0 : index
    %c0_32 = arith.constant 0 : index
    %c0_33 = arith.constant 0 : index
    %227 = vector.load %arg4[%c0_31, %c0_32, %c0_33] : memref<2x8x128xf32, #tpu.memory_space<vmem>>, vector<2x8x128xf32>
    %c0_34 = arith.constant 0 : index
    %c0_35 = arith.constant 0 : index
    %228 = vector.load %arg5[%c0_34, %c0_35] : memref<8x128xf32, #tpu.memory_space<vmem>>, vector<8x128xf32>
    %229 = vector.extract_strided_slice %227 {offsets = [1, 0, 0], sizes = [1, 8, 128], strides = [1, 1, 1]} : vector<2x8x128xf32> to vector<1x8x128xf32>
    %230 = vector.shape_cast %229 : vector<1x8x128xf32> to vector<8x128xf32>
    %231 = vector.extract_strided_slice %227 {offsets = [0, 0, 0], sizes = [1, 8, 128], strides = [1, 1, 1]} : vector<2x8x128xf32> to vector<1x8x128xf32>
    %232 = vector.shape_cast %231 : vector<1x8x128xf32> to vector<8x128xf32>
    %233 = arith.subf %230, %232 : vector<8x128xf32>
    %234 = arith.mulf %228, %233 : vector<8x128xf32>
    %cst_36 = arith.constant 0.000000e+00 : f32
    %235 = vector.broadcast %cst_36 : f32 to vector<8x128xf32>
    %236 = arith.subf %235, %234 : vector<8x128xf32>
    %cst_37 = arith.constant 0.000000e+00 : f32
    %237 = vector.broadcast %cst_37 : f32 to vector<8x128xf32>
    %238 = arith.maximumf %236, %237 : vector<8x128xf32>
    %239 = math.absf %234 : vector<8x128xf32>
    %cst_38 = arith.constant 0.000000e+00 : f32
    %240 = vector.broadcast %cst_38 : f32 to vector<8x128xf32>
    %241 = arith.subf %240, %239 : vector<8x128xf32>
    %242 = math.exp %241 : vector<8x128xf32>
    %243 = math.log1p %242 : vector<8x128xf32>
    %244 = arith.addf %238, %243 : vector<8x128xf32>
    %cst_39 = arith.constant dense<0.000000e+00> : vector<128xf32>
    %245 = vector.multi_reduction <add>, %244, %cst_39 [0] : vector<8x128xf32> to vector<128xf32>
    %246 = vector.shape_cast %245 : vector<128xf32> to vector<1x128xf32>
    %247 = tpu.iota {dimensions = array<i32: 1>} : vector<1x128xi32>
    %c128_i32 = arith.constant 128 : i32
    %248 = arith.muli %arg0, %c128_i32 : i32
    %249 = vector.broadcast %248 : i32 to vector<1x128xi32>
    %250 = arith.addi %247, %249 : vector<1x128xi32>
    %c10_i32 = arith.constant 10 : i32
    %251 = vector.broadcast %c10_i32 : i32 to vector<1x128xi32>
    %252 = arith.cmpi slt, %250, %251 : vector<1x128xi32>
    %cst_40 = arith.constant 0.000000e+00 : f32
    %253 = vector.broadcast %cst_40 : f32 to vector<1x128xf32>
    %254 = arith.select %252, %226, %253 : vector<1x128xi1>, vector<1x128xf32>
    %cst_41 = arith.constant 0.000000e+00 : f32
    %255 = vector.broadcast %cst_41 : f32 to vector<1x128xf32>
    %256 = arith.select %252, %246, %255 : vector<1x128xi1>, vector<1x128xf32>
    %c0_42 = arith.constant 0 : index
    %c0_43 = arith.constant 0 : index
    %c0_44 = arith.constant 0 : index
    %257 = vector.load %arg7[%c0_42, %c0_43, %c0_44] : memref<1x1x128xf32, #tpu.memory_space<vmem>>, vector<1x1x128xf32>
    %258 = vector.shape_cast %257 : vector<1x1x128xf32> to vector<1x128xf32>
    %259 = vector.shape_cast %254 : vector<1x128xf32> to vector<1x1x128xf32>
    tpu.vector_store %arg7[%c0_42, %c0_43, %c0_44], %259 {strides = array<i32>} : memref<1x1x128xf32, #tpu.memory_space<vmem>>, vector<1x1x128xf32>,
    %c0_45 = arith.constant 0 : index
    %c0_46 = arith.constant 0 : index
    %c0_47 = arith.constant 0 : index
    %260 = vector.load %arg8[%c0_45, %c0_46, %c0_47] : memref<1x1x128xf32, #tpu.memory_space<vmem>>, vector<1x1x128xf32>
    %261 = vector.shape_cast %260 : vector<1x1x128xf32> to vector<1x128xf32>
    %262 = vector.shape_cast %256 : vector<1x128xf32> to vector<1x1x128xf32>
    tpu.vector_store %arg8[%c0_45, %c0_46, %c0_47], %262 {strides = array<i32>} : memref<1x1x128xf32, #tpu.memory_space<vmem>>, vector<1x1x128xf32>,
    return
  }
  func.func @transform_0(%arg0: i32) -> (i32, i32, i32) {
    %c0_i32 = arith.constant 0 : i32
    %c0_i32_0 = arith.constant 0 : i32
    %c0_i32_1 = arith.constant 0 : i32
    return %c0_i32, %c0_i32_0, %arg0 : i32, i32, i32
  }
  func.func @transform_1(%arg0: i32) -> (i32, i32, i32) {
    %c0_i32 = arith.constant 0 : i32
    %c0_i32_0 = arith.constant 0 : i32
    %c0_i32_1 = arith.constant 0 : i32
    return %c0_i32, %c0_i32_0, %arg0 : i32, i32, i32
  }
  func.func @transform_2(%arg0: i32) -> (i32, i32, i32) {
    %c0_i32 = arith.constant 0 : i32
    %c0_i32_0 = arith.constant 0 : i32
    %c0_i32_1 = arith.constant 0 : i32
    return %c0_i32, %c0_i32_0, %arg0 : i32, i32, i32
  }
  func.func @transform_3(%arg0: i32) -> (i32, i32, i32) {
    %c0_i32 = arith.constant 0 : i32
    %c0_i32_0 = arith.constant 0 : i32
    %c0_i32_1 = arith.constant 0 : i32
    return %c0_i32, %c0_i32_0, %arg0 : i32, i32, i32
  }
  func.func @transform_4(%arg0: i32) -> (i32, i32) {
    %c0_i32 = arith.constant 0 : i32
    %c0_i32_0 = arith.constant 0 : i32
    return %c0_i32, %arg0 : i32, i32
  }
  func.func @transform_5(%arg0: i32) -> (i32, i32, i32) {
    %c0_i32 = arith.constant 0 : i32
    %c0_i32_0 = arith.constant 0 : i32
    %c0_i32_1 = arith.constant 0 : i32
    return %c0_i32, %c0_i32_0, %arg0 : i32, i32, i32
  }
  func.func @transform_6(%arg0: i32) -> (i32, i32, i32) {
    %c0_i32 = arith.constant 0 : i32
    %c0_i32_0 = arith.constant 0 : i32
    %c0_i32_1 = arith.constant 0 : i32
    return %arg0, %c0_i32, %c0_i32_0 : i32, i32, i32
  }
  func.func @transform_7(%arg0: i32) -> (i32, i32, i32) {
    %c0_i32 = arith.constant 0 : i32
    %c0_i32_0 = arith.constant 0 : i32
    %c0_i32_1 = arith.constant 0 : i32
    return %arg0, %c0_i32, %c0_i32_0 : i32, i32, i32
  }
}

</mosaic_0001>

<bundles_post_ra>
// kernel: tpu_custom_call.1
= control target key start
LH: loop header
LB: loop body
LE: loop exit
PB: predicated region body
PF: predicated region fallthrough
CT: control target
= control target key end

     0   :  { %13 = vsyncpa [#allocation3], 0  ;;  %s776_s0 = inlined_call_operand.hbm [shape: f32[7,4,10], index: 0, kind: input, shape index: {}]   ;;  %s777_s1 = inlined_call_operand.hbm [shape: f32[3,8,10], index: 1, kind: input, shape index: {}]   ;;  %s778_s2 = inlined_call_operand.hbm [shape: f32[3,8,10], index: 2, kind: input, shape index: {}]   ;;  %s779_s3 = inlined_call_operand.hbm [shape: f32[2,8,10], index: 3, kind: input, shape index: {}]   ;;  %s780_s4 = inlined_call_operand.vmem [shape: f32[8,10], index: 4, kind: input, shape index: {}]   ;;  %s781_s5 = inlined_call_operand.hbm [shape: f32[3,8,128], index: 5, kind: output, shape index: {0}]   ;;  %s782_s6 = inlined_call_operand.hbm [shape: f32[1,1,128], index: 6, kind: output, shape index: {1}]   ;;  %s783_s7 = inlined_call_operand.hbm [shape: f32[1,1,128], index: 7, kind: output, shape index: {2}]  }
   0x1   :  { %14 = vsyncpa [#allocation6], 0 }
   0x2   :  { %15 = vsyncpa [#allocation9], 0 }
   0x3   :  { %16 = vsyncpa [#allocation4], 0 }
   0x4   :  { %17 = vsyncpa [#allocation12], 0  ;;  %s567_s24 = smov [#allocation5]   ;;  %s403_s28 = scalar_lea.hbm %s777_s1, 384 }
   0x5   :  { %s35_s25 = sshll.u32 %s567_s24, 4  ;;  %p404_p0 = scmp.ne.s32.totalorder %s777_s1, %s403_s28  ;;  %s36_s25 = int_to_ptr.vmem [resolvable:$true] %s35_s25 }
   0x6   :  { %p407_p1 = scmp.lt.u32.totalorder %s403_s28, %s777_s1 }
   0x8   :  { %p409_p2 = pnand %p407_p1, %p404_p0 }
   0xa   :  { %412 = shalt.err (!%p409_p2)
}
   0xb   :  { %s413_s10 = scalar_lea.vmem %s36_s25, 384  ;;  %p418_p4 = scmp.lt.s32.totalorder %s36_s25, %s36_s25 }
   0xc   :  { %p414_p3 = scmp.ne.s32.totalorder %s36_s25, %s413_s10  ;;  %p419_p5 = scmp.lt.s32.totalorder %s413_s10, %s413_s10 }
   0xe   :  { %p420_p6 = por %p419_p5, %p418_p4 }
  0x10   :  { %p421_p7 = pnand %p420_p6, %p414_p3 }
  0x12   :  { %424 = shalt.err (!%p421_p7)
}
  0x13   :  { %s568_s11 = smov 128   ;;  %s569_s12 = smov 8  }
  0x14   :  { %41 = dma.hbm_to_vmem [thread:$0]  %s777_s1, 384, %s36_s25, [#allocation6], %s568_s11, %s568_s11, %s569_s12  }
  0x15   :  { %s570_s15 = smov [#allocation2]   ;;  %s425_s19 = scalar_lea.hbm %s776_s0, 448 }
  0x16   :  { %s23_s16 = sshll.u32 %s570_s15, 4  ;;  %p426_p8 = scmp.ne.s32.totalorder %s776_s0, %s425_s19  ;;  %s24_s16 = int_to_ptr.vmem [resolvable:$true] %s23_s16 }
  0x17   :  { %p429_p9 = scmp.lt.u32.totalorder %s425_s19, %s776_s0 }
  0x19   :  { %p431_p10 = pnand %p429_p9, %p426_p8 }
  0x1b   :  { %434 = shalt.err (!%p431_p10)
}
  0x1c   :  { %s435_s24 = scalar_lea.vmem %s24_s16, 448  ;;  %p440_p12 = scmp.lt.s32.totalorder %s24_s16, %s24_s16 }
  0x1d   :  { %p436_p11 = scmp.ne.s32.totalorder %s24_s16, %s435_s24  ;;  %p441_p13 = scmp.lt.s32.totalorder %s435_s24, %s435_s24 }
  0x1f   :  { %p442_p0 = por %p441_p13, %p440_p12 }
  0x21   :  { %p443_p1 = pnand %p442_p0, %p436_p11 }
  0x23   :  { %446 = shalt.err (!%p443_p1)
}
  0x24   :  { %s571_s1 = smov 64   ;;  %s572_s25 = smov 4  }
  0x25   :  { %29 = dma.hbm_to_vmem [thread:$0]  %s776_s0, 448, %s24_s16, [#allocation3], %s571_s1, %s571_s1, %s572_s25  }
  0x26   :  { %s573_s28 = smov [#allocation7]   ;;  %s574_s30 = smov [#allocation8]  }
  0x27   :  { %s47_s29 = sshll.u32 %s573_s28, 4  ;;  %s59_s8 = sshll.u32 %s574_s30, 4  ;;  %s48_s29 = int_to_ptr.vmem [resolvable:$true] %s47_s29  ;;  %s645_s8 = int_to_ptr.vmem [resolvable:$true] %s59_s8 }
  0x28   :  { %s447_s13 = scalar_lea.hbm %s778_s2, 384 }
  0x29   :  { %p448_p2 = scmp.ne.s32.totalorder %s778_s2, %s447_s13  ;;  %p451_p3 = scmp.lt.u32.totalorder %s447_s13, %s778_s2 }
  0x2b   :  { %p453_p4 = pnand %p451_p3, %p448_p2 }
  0x2d   :  { %456 = shalt.err (!%p453_p4)
}
  0x2e   :  { %s457_s0 = scalar_lea.vmem %s48_s29, 384  ;;  %p462_p6 = scmp.lt.s32.totalorder %s48_s29, %s48_s29 }
  0x2f   :  { %p458_p5 = scmp.ne.s32.totalorder %s48_s29, %s457_s0  ;;  %p463_p7 = scmp.lt.s32.totalorder %s457_s0, %s457_s0 }
  0x31   :  { %p464_p8 = por %p463_p7, %p462_p6 }
  0x33   :  { %p465_p9 = pnand %p464_p8, %p458_p5 }
  0x35   :  { %468 = shalt.err (!%p465_p9)
}
  0x36   :  { %53 = dma.hbm_to_vmem [thread:$0]  %s778_s2, 384, %s48_s29, [#allocation6], %s568_s11, %s568_s11, %s569_s12  }
  0x37   :  { %s469_s22 = scalar_lea.hbm %s779_s3, 256 }
  0x38   :  { %p470_p10 = scmp.ne.s32.totalorder %s779_s3, %s469_s22  ;;  %p473_p11 = scmp.lt.u32.totalorder %s469_s22, %s779_s3 }
  0x3a   :  { %p475_p12 = pnand %p473_p11, %p470_p10 }
  0x3c   :  { %478 = shalt.err (!%p475_p12)
}
  0x3d   :  { %s479_s26 = scalar_lea.vmem %s645_s8, 256  ;;  %p484_p0 = scmp.lt.s32.totalorder %s645_s8, %s645_s8 }
  0x3e   :  { %p480_p13 = scmp.ne.s32.totalorder %s645_s8, %s479_s26  ;;  %p485_p1 = scmp.lt.s32.totalorder %s479_s26, %s479_s26 }
  0x40   :  { %p486_p2 = por %p485_p1, %p484_p0 }
  0x42   :  { %p487_p3 = pnand %p486_p2, %p480_p13 }
  0x44   :  { %490 = shalt.err (!%p487_p3)
}
  0x45   :  { %65 = dma.hbm_to_vmem [thread:$0]  %s779_s3, 256, %s645_s8, [#allocation9], %s568_s11, %s568_s11, %s569_s12  }
  0x46   :  { %557 = dma.done.wait [#allocation3], 448  }
  0x47   :  { %558 = vsyncadd [#allocation3], 4294966848 }
  0x48   :  { %559 = dma.done.wait [#allocation6], 768  }
  0x49   :  { %560 = vsyncadd [#allocation6], 4294966528 }
  0x4a   :  { %561 = dma.done.wait [#allocation9], 256  }
  0x4b   :  { %562 = vsyncadd [#allocation9], 4294967040  ;;  %v80_v0 = vld [vmem:[#allocation2] sm:$0xf]  ;;  %v81_v1 = vld [vmem:[#allocation2 + $0x4] sm:$0xf]  ;;  %v103_v13 = vlaneseq }
  0x4c   :  { %v82_v2 = vld [vmem:[#allocation2 + $0x8] sm:$0xf]  ;;  %v87_v3 = vmul.f32 %v80_v0, %v80_v0  ;;  %v88_v4 = vmul.f32 %v81_v1, %v81_v1  ;;  %v295_v7 = vld [vmem:[#allocation8] sm:$0xff]  ;;  %v296_v8 = vld [vmem:[#allocation8 + $0x8] sm:$0xff]  ;;  %s575_s3 = smov [#allocation10]  }
  0x4d   :  { %v90_v5 = vmul.f32 %v82_v2, %v82_v2  ;;  %v297_v10 = vld [vmem:[%s780_s4] sm:$0xff]  ;;  %v298_v11 = vsub.f32 %v296_v8, %v295_v7  ;;  %v104_v16 = vshrl.u32 %v103_v13, 7  ;;  %v83_v18 = vld [vmem:[#allocation2 + $0xc] sm:$0xf]  ;;  %s337_s4 = sshll.u32 %s575_s3, 4  ;;  %s338_s4 = int_to_ptr.vmem [resolvable:$true] %s337_s4 }
  0x4e   :  { %v89_v6 = vadd.f32 %v88_v4, %v87_v3  ;;  %v97_v20 = vsub.f32 0.0, %v83_v18  ;;  %v98_v28 = vld [vmem:[#allocation5] sm:$0xff]  ;;  %v100_v29 = vld [vmem:[#allocation5 + $0x8] sm:$0xff]  ;;  %v102_v30 = vld [vmem:[#allocation5 + $0x10] sm:$0xff]  ;;  %s491_s30 = scalar_lea.vmem %s338_s4, 384  ;;  %p496_p5 = scmp.lt.s32.totalorder %s338_s4, %s338_s4 }
  0x4f   :  { %v685_v12 = vmul.f32 %v298_v11, %v297_v10  ;;  %v689_v22 = vsub.s32 0, %v104_v16  ;;  %v691_v23 = vsub.s32 1, %v104_v16  ;;  %v693_v24 = vsub.s32 2, %v104_v16  ;;  %p492_p4 = scmp.ne.s32.totalorder %s338_s4, %s491_s30  ;;  %p497_p6 = scmp.lt.s32.totalorder %s491_s30, %s491_s30 }
  0x50   :  { %v91_v9 = vadd.f32 %v90_v5, %v89_v6  ;;  %v698_v34 = vsub.s32 3, %v104_v16 }
  0x51   :  { %v302_v14 = vand.u32 2147483647, %v685_v12  ;;  %v123_v31 = vrot.slane %v97_v20, %v689_v22  ;;  %v165_v32 = vrot.slane %v97_v20, %v691_v23  ;;  %v207_v33 = vrot.slane %v97_v20, %v693_v24  ;;  %p498_p7 = por %p497_p6, %p496_p5 }
  0x52   :  { %389 = vrsqrt.f32 %v91_v9 }
  0x53   :  { %v303_v15 = vsub.f32 0.0, %v302_v14  ;;  %p499_p8 = pnand %p498_p7, %p492_p4 }
  0x55   :  { %v304_v17 = vmul.f32 1.442695, %v303_v15 }
  0x57   :  { %391 = vpow2.f32 %v304_v17  ;;  %v300_v17 = vsub.f32 0.0, %v685_v12 }
  0x5c   :  { %v390_v19 = vpop.eup %389 }
  0x5d   :  { %v93_v21 = vmul.f32 %v390_v19, %v83_v18 }
  0x5f   :  { %v94_v25 = vmul.f32 %v93_v21, %v80_v0  ;;  %v95_v26 = vmul.f32 %v93_v21, %v81_v1  ;;  %v96_v27 = vmul.f32 %v93_v21, %v82_v2  ;;  %v249_v2 = vrot.slane %v97_v20, %v698_v34  ;;  %v84_v20 = vld [vmem:[#allocation2 + $0x10] sm:$0xf]  ;;  %v85_v21 = vld [vmem:[#allocation2 + $0x14] sm:$0xf] }
  0x60   :  { %v172_v12 = vrot.slane %v84_v20, %v691_v23 }
  0x61   :  { %v106_v35 = vrot.slane %v94_v25, %v689_v22  ;;  %v111_v36 = vrot.slane %v95_v26, %v689_v22  ;;  %v117_v37 = vrot.slane %v96_v27, %v689_v22  ;;  %v148_v38 = vrot.slane %v94_v25, %v691_v23  ;;  %v392_v51 = vpop.eup %391 }
  0x62   :  { %v153_v39 = vrot.slane %v95_v26, %v691_v23  ;;  %v159_v40 = vrot.slane %v96_v27, %v691_v23  ;;  %v190_v41 = vrot.slane %v94_v25, %v693_v24  ;;  %v195_v42 = vrot.slane %v95_v26, %v693_v24 }
  0x63   :  { %v107_v43 = vmul.f32 %v106_v35, %v98_v28  ;;  %v112_v44 = vmul.f32 %v111_v36, %v100_v29  ;;  %v118_v45 = vmul.f32 %v117_v37, %v102_v30  ;;  %v149_v46 = vmul.f32 %v148_v38, %v98_v28 }
  0x64   :  { %v154_v47 = vmul.f32 %v153_v39, %v100_v29  ;;  %v160_v48 = vmul.f32 %v159_v40, %v102_v30  ;;  %v191_v49 = vmul.f32 %v190_v41, %v98_v28  ;;  %v196_v50 = vmul.f32 %v195_v42, %v100_v29 }
  0x65   :  { %v113_v52 = vadd.f32 %v112_v44, %v107_v43  ;;  %v201_v53 = vrot.slane %v96_v27, %v693_v24  ;;  %v232_v54 = vrot.slane %v94_v25, %v698_v34  ;;  %v237_v55 = vrot.slane %v95_v26, %v698_v34  ;;  %v86_v25 = vld [vmem:[#allocation2 + $0x18] sm:$0xf] }
  0x66   :  { %v155_v56 = vadd.f32 %v154_v47, %v149_v46  ;;  %v197_v57 = vadd.f32 %v196_v50, %v191_v49  ;;  %v243_v58 = vrot.slane %v96_v27, %v698_v34  ;;  %v306_v59 = vadd.f32 1.0, %v392_v51 }
  0x67   :  { %v119_v60 = vadd.f32 %v118_v45, %v113_v52  ;;  %v202_v61 = vmul.f32 %v201_v53, %v102_v30  ;;  %v233_v62 = vmul.f32 %v232_v54, %v98_v28  ;;  %v238_v63 = vmul.f32 %v237_v55, %v100_v29 }
  0x68   :  { %v161_v0 = vadd.f32 %v160_v48, %v155_v56  ;;  %v244_v1 = vmul.f32 %v243_v58, %v102_v30  ;;  %393 = vlog2.f32 %v306_v59  ;;  %v309_v6 = vmul.f32 -0.5, %v392_v51 }
  0x69   :  { %v124_v3 = vadd.f32 %v123_v31, %v119_v60  ;;  %v203_v4 = vadd.f32 %v202_v61, %v197_v57  ;;  %v239_v5 = vadd.f32 %v238_v63, %v233_v62  ;;  %v312_v18 = vand.u32 2147483647, %v392_v51 }
  0x6a   :  { %v166_v7 = vadd.f32 %v165_v32, %v161_v0  ;;  %v310_v16 = vadd.f32 1.0, %v309_v6  ;;  %v301_v28 = vmax.f32 %v300_v17, 0.0  ;;  %v130_v30 = vrot.slane %v84_v20, %v689_v22 }
  0x6b   :  { %v125_v8 = vmul.f32 1.442695, %v124_v3  ;;  %v208_v9 = vadd.f32 %v207_v33, %v203_v4  ;;  %v245_v10 = vadd.f32 %v244_v1, %v239_v5  ;;  %vm313_vm0 = vcmp.lt.f32.partialorder %v312_v18, 0.0004427343  ;;  %v278_v3 = vld [vmem:[#allocation7 + $0x8] sm:$0xff]  ;;  %v285_v4 = vld [vmem:[#allocation7 + $0x10] sm:$0xff] }
  0x6c   :  { %v167_v11 = vmul.f32 1.442695, %v166_v7  ;;  %v311_v26 = vmul.f32 %v392_v51, %v310_v16  ;;  %v136_v31 = vrot.slane %v85_v21, %v689_v22  ;;  %v142_v32 = vrot.slane %v86_v25, %v689_v22 }
  0x6d   :  { %395 = vpow2.f32 %v125_v8  ;;  %v209_v14 = vmul.f32 1.442695, %v208_v9  ;;  %v250_v15 = vadd.f32 %v249_v2, %v245_v10  ;;  %v178_v33 = vrot.slane %v85_v21, %v691_v23  ;;  %v272_v2 = vld [vmem:[#allocation7] sm:$0xff] }
  0x6e   :  { %397 = vpow2.f32 %v167_v11  ;;  %v184_v35 = vrot.slane %v86_v25, %v691_v23  ;;  %v214_v37 = vrot.slane %v84_v20, %v693_v24  ;;  %v220_v38 = vrot.slane %v85_v21, %v693_v24 }
  0x6f   :  { %399 = vpow2.f32 %v209_v14  ;;  %v251_v19 = vmul.f32 1.442695, %v250_v15  ;;  %v226_v39 = vrot.slane %v86_v25, %v693_v24  ;;  %v256_v42 = vrot.slane %v84_v20, %v698_v34 }
  0x70   :  { %v262_v43 = vrot.slane %v85_v21, %v698_v34  ;;  %v268_v22 = vrot.slane %v86_v25, %v698_v34  ;;  %v323_v1 = vand.u32 127, %v103_v13 }
  0x71   :  { %401 = vpow2.f32 %v251_v19 }
  0x72   :  { %v394_v27 = vpop.eup %393  ;;  %vm327_vm1 = vcmp.lt.s32.totalorder %v323_v1, 10 }
  0x73   :  { %v308_v29 = vmul.f32 0.6931472, %v394_v27 }
  0x75   :  { %v314_v36 = vsel %vm313_vm0, %v311_v26, %v308_v29 }
  0x76   :  { %v315_v40 = vadd.f32 %v314_v36, %v301_v28 }
  0x77   :  { %v396_v41 = vpop.eup %395 }
  0x78   :  { %v398_v44 = vpop.eup %397  ;;  %v131_v45 = vmul.f32 %v396_v41, %v130_v30  ;;  %v137_v46 = vmul.f32 %v396_v41, %v136_v31  ;;  %v143_v47 = vmul.f32 %v396_v41, %v142_v32  ;;  %v316_v23 = vrot.slane %v315_v40, 4 }
  0x79   :  { %v400_v48 = vpop.eup %399  ;;  %v173_v49 = vmul.f32 %v398_v44, %v172_v12  ;;  %v179_v50 = vmul.f32 %v398_v44, %v178_v33  ;;  %v185_v51 = vmul.f32 %v398_v44, %v184_v35 }
  0x7a   :  { %v215_v52 = vmul.f32 %v400_v48, %v214_v37  ;;  %v221_v53 = vmul.f32 %v400_v48, %v220_v38  ;;  %v227_v24 = vmul.f32 %v400_v48, %v226_v39  ;;  %v317_v54 = vadd.f32 %v316_v23, %v315_v40 }
  0x7b   :  { %v402_v55 = vpop.eup %401  ;;  %v174_v56 = vadd.f32 %v173_v49, %v131_v45  ;;  %v180_v57 = vadd.f32 %v179_v50, %v137_v46  ;;  %v186_v58 = vadd.f32 %v185_v51, %v143_v47 }
  0x7c   :  { %v257_v59 = vmul.f32 %v402_v55, %v256_v42  ;;  %v263_v60 = vmul.f32 %v402_v55, %v262_v43  ;;  %v269_v34 = vmul.f32 %v402_v55, %v268_v22  ;;  %v318_v61 = vrot.slane %v317_v54, 2 }
  0x7d   :  { %v216_v62 = vadd.f32 %v215_v52, %v174_v56  ;;  %v222_v63 = vadd.f32 %v221_v53, %v180_v57  ;;  %v228_v0 = vadd.f32 %v227_v24, %v186_v58 }
  0x7e   :  { %v319_v5 = vadd.f32 %v318_v61, %v317_v54 }
  0x7f   :  { %v258_v6 = vadd.f32 %v257_v59, %v216_v62  ;;  %v264_v7 = vadd.f32 %v263_v60, %v222_v63  ;;  %v270_v8 = vadd.f32 %v269_v34, %v228_v0 }
  0x80   :  { %v320_v9 = vrot.slane %v319_v5, 1 }
  0x81   :  { %v273_v10 = vsub.f32 %v272_v2, %v258_v6  ;;  %v279_v11 = vsub.f32 %v278_v3, %v264_v7  ;;  %v286_v14 = vsub.f32 %v285_v4, %v270_v8  ;;  %271 = vst [vmem:[#allocation10] sm:$0xff] %v258_v6  ;;  %276 = vst [vmem:[#allocation10 + $0x8] sm:$0xff] %v264_v7 }
  0x82   :  { %283 = vst [vmem:[#allocation10 + $0x10] sm:$0xff] %v270_v8  ;;  %v321_v15 = vadd.f32 %v320_v9, %v319_v5 }
  0x83   :  { %502 = shalt.err (!%p499_p8)
}
  0x84   :  { %s503_s10 = scalar_lea.hbm %s781_s5, 384 }
  0x85   :  { %p504_p9 = scmp.ne.s32.totalorder %s781_s5, %s503_s10  ;;  %p507_p10 = scmp.lt.u32.totalorder %s503_s10, %s781_s5 }
  0x87   :  { %p509_p11 = pnand %p507_p10, %p504_p9 }
  0x89   :  { %512 = shalt.err (!%p509_p11)
}
  0x8a   :  { %343 = dma.vmem_to_hbm [thread:$0]  %s338_s4, 384, %s781_s5, [#allocation4], %s568_s11, %s568_s11, %s569_s12   ;;  %v274_v13 = vand.u32 2147483647, %v273_v10  ;;  %v280_v16 = vand.u32 2147483647, %v279_v11 }
  0x8b   :  { %v287_v17 = vand.u32 2147483647, %v286_v14  ;;  %v329_v18 = vsel %vm327_vm1, %v321_v15, 0.0  ;;  %s576_s16 = smov [#allocation11]   ;;  %s577_s20 = smov [#allocation13]  }
  0x8c   :  { %v281_v19 = vadd.f32 %v280_v16, %v274_v13  ;;  %331 = vst [vmem:[#allocation13] sm:$0x1] %v329_v18  ;;  %s350_s19 = sshll.u32 %s576_s16, 4  ;;  %s360_s21 = sshll.u32 %s577_s20, 4  ;;  %s351_s19 = int_to_ptr.vmem [resolvable:$true] %s350_s19  ;;  %s744_s21 = int_to_ptr.vmem [resolvable:$true] %s360_s21 }
  0x8d   :  { %s513_s5 = scalar_lea.vmem %s351_s19, 16  ;;  %s517_s11 = scalar_lea.vmem %s351_s19, 32 }
  0x8e   :  { %v288_v20 = vadd.f32 %v287_v17, %v281_v19  ;;  %p514_p12 = scmp.ne.s32.totalorder %s351_s19, %s513_s5  ;;  %p518_p13 = scmp.lt.s32.totalorder %s351_s19, %s351_s19 }
  0x8f   :  { %p519_p0 = scmp.lt.s32.totalorder %s517_s11, %s513_s5 }
  0x90   :  { %v289_v21 = vrot.slane %v288_v20, 4 }
  0x91   :  { %p520_p1 = por %p519_p0, %p518_p13 }
  0x92   :  { %v290_v25 = vadd.f32 %v289_v21, %v288_v20 }
  0x93   :  { %p521_p2 = pnand %p520_p1, %p514_p12 }
  0x94   :  { %v291_v26 = vrot.slane %v290_v25, 2 }
  0x96   :  { %v292_v27 = vadd.f32 %v291_v26, %v290_v25 }
  0x98   :  { %v293_v28 = vrot.slane %v292_v27, 1 }
  0x9a   :  { %v294_v29 = vadd.f32 %v293_v28, %v292_v27 }
  0x9c   :  { %v328_v30 = vsel %vm327_vm1, %v294_v29, 0.0 }
  0x9d   :  { %330 = vst [vmem:[#allocation11] sm:$0x1] %v328_v30 }
  0x9e   :  { %524 = shalt.err (!%p521_p2)
}
  0x9f   :  { %s525_s23 = scalar_lea.hbm %s782_s6, 16 }
  0xa0   :  { %p526_p3 = scmp.ne.s32.totalorder %s782_s6, %s525_s23  ;;  %p529_p4 = scmp.lt.u32.totalorder %s525_s23, %s782_s6 }
  0xa2   :  { %p531_p5 = pnand %p529_p4, %p526_p3 }
  0xa4   :  { %534 = shalt.err (!%p531_p5)
}
  0xa5   :  { %353 = dma.vmem_to_hbm [thread:$0]  %s351_s19, 16, %s782_s6, [#allocation12]  }
  0xa6   :  { %s535_s28 = scalar_lea.vmem %s744_s21, 16  ;;  %s539_s29 = scalar_lea.vmem %s744_s21, 32 }
  0xa7   :  { %p536_p6 = scmp.ne.s32.totalorder %s744_s21, %s535_s28  ;;  %p540_p7 = scmp.lt.s32.totalorder %s744_s21, %s744_s21 }
  0xa8   :  { %p541_p8 = scmp.lt.s32.totalorder %s539_s29, %s535_s28 }
  0xaa   :  { %p542_p9 = por %p541_p8, %p540_p7 }
  0xac   :  { %p543_p10 = pnand %p542_p9, %p536_p6 }
  0xae   :  { %546 = shalt.err (!%p543_p10)
}
  0xaf   :  { %s547_s30 = scalar_lea.hbm %s783_s7, 16 }
  0xb0   :  { %p548_p11 = scmp.ne.s32.totalorder %s783_s7, %s547_s30  ;;  %p551_p12 = scmp.lt.u32.totalorder %s547_s30, %s783_s7 }
  0xb2   :  { %p553_p13 = pnand %p551_p12, %p548_p11 }
  0xb4   :  { %556 = shalt.err (!%p553_p13)
}
  0xb5   :  { %363 = dma.vmem_to_hbm [thread:$0]  %s744_s21, 16, %s783_s7, [#allocation12]  }
  0xb6   :  { %563 = dma.done.wait [#allocation4], 384  }
  0xb7   :  { %564 = vsyncadd [#allocation4], 4294966912 }
  0xb8   :  { %565 = dma.done.wait [#allocation12], 32  }
  0xb9   :  { %566 = vsyncadd [#allocation12], 4294967264 }
  0xba   :  { %373 = vsyncpa [#allocation3], 1 }
  0xbb   :  { %374 = vsyncpa [#allocation6], 1 }
  0xbc   :  { %375 = vsyncpa [#allocation9], 1 }
  0xbd   :  { %376 = vsyncpa [#allocation4], 1 }
  0xbe   :  { %377 = vsyncpa [#allocation12], 1 }

</bundles_post_ra>
